<compile_context>
chip_gen: v7x
topology: tpu7x:2x2x1
jax: 0.10.0
libtpu: 0.0.40
codegen_flags: <defaults>
</compile_context>

<pallas_src>
import functools
import numpy as np
import jax
import jax.numpy as jnp
from jax.experimental import pallas as pl
from jax.experimental.pallas import tpu as pltpu

BN_EPS = 1e-5


def crack(integer):
    start = int(np.sqrt(integer))
    factor = integer / start
    while int(factor) != factor:
        start += 1
        factor = integer / start
    return (int(factor), start)


# ----------------------------------------------------------------------------
# Pallas kernel: stage-1 depthwise H-conv (+bn1+relu) on the VPU, then a single
# fused MXU matmul per r1-copy that implements conv2+bn2+pointwise+shuffle+bn3.
# ----------------------------------------------------------------------------
def _microblock_kernel(x_ref, w1_ref, b1_ref, m_ref, bo_ref, o_ref,
                       *, K, SH, H1, R1, WC):
    x = x_ref[...]                                # (BT, H_pad, W*C)
    BT = x.shape[0]
    w1 = w1_ref[...]                              # (R1, K, W*C)  bn1-scale folded
    b1 = b1_ref[...]                              # (R1, 1, W*C)  bn1 shift
    M = m_ref[...]                                # (R1, W*C, W2*MID) fused matrix

    # H taps (strided row slices of the zero-padded input), hoisted out of the
    # r1 loop.
    taps = [jax.lax.slice(x, (0, kh, 0),
                          (BT, kh + SH * (H1 - 1) + 1, WC), (1, SH, 1))
            for kh in range(K)]

    out2d = None
    for m1 in range(R1):
        # facdep_conv1 + bn1 + relu for this expansion copy (pure VPU).
        acc = taps[0] * w1[m1, 0]                 # init from first tap
        for kh in range(1, K):
            acc = acc + taps[kh] * w1[m1, kh]
        y1 = jnp.maximum(acc + b1[m1], 0.0)       # (BT, H1, W*C)

        # facdep_conv2 + bn2 + dysmax1(id) + facpoint_conv + shuffle + bn3,
        # all folded into one lane-mixing matrix -> single MXU dot.
        contrib = jnp.dot(y1.reshape(BT * H1, WC), M[m1],
                          preferred_element_type=jnp.float32)
        out2d = contrib if out2d is None else out2d + contrib

    out2d = out2d + bo_ref[...]                   # fused bias (b2,bn3 folded)
    # lane-dense store: last dim = W2*MID
    o_ref[...] = out2d.reshape(BT, H1, -1).astype(o_ref.dtype)


# ----------------------------------------------------------------------------
# Host-side parameter folding.
# ----------------------------------------------------------------------------
def prepare_kernel_params(params, cfg, W):
    C, R1, R2 = cfg['C'], cfg['r1'], cfg['r2']
    G0, K, MID, S = cfg['G0'], cfg['K'], cfg['mid'], cfg['stride']
    C1, C2 = C * R1, C * R1 * R2
    P = (K - 1) // 2
    W2 = (W + 2 * P - K) // S + 1
    CpG, MpG = C2 // G0, MID // G0

    def fold_bn(bn):
        g, b, m, v = (np.asarray(t, np.float64) for t in bn)
        s = g / np.sqrt(v + BN_EPS)
        return s, b - m * s

    s1, b1f = fold_bn(params['bn1'])
    s2, b2f = fold_bn(params['bn2'])
    s3, b3f = fold_bn(params['bn3'])

    W1 = np.asarray(params['W1'], np.float64)[:, 0, :, 0]     # (C1, K)
    W2w = np.asarray(params['W2'], np.float64)[:, 0, 0, :]    # (C2, K)
    W3 = np.asarray(params['W3'], np.float64)[:, :, 0, 0]     # (MID, C2//G0)

    # --- stage 1: per-lane tap weights (lane = w*C + c), bn1 scale folded ---
    w1lane = np.zeros((R1, K, W, C))
    b1lane = np.zeros((R1, 1, W, C))
    for m1 in range(R1):
        for c in range(C):
            o1 = c * R1 + m1                      # conv1 output channel
            w1lane[m1, :, :, c] = (W1[o1] * s1[o1])[:, None]
            b1lane[m1, 0, :, c] = b1f[o1]
    w1lane = w1lane.reshape(R1, K, W * C)
    b1lane = b1lane.reshape(R1, 1, W * C)

    # --- pointwise conv + channel shuffle + bn2/bn3 scales: (C2, MID) map ---
    A = np.zeros((C2, MID))
    for q in range(MID):
        sq = (q % G0) * MpG + (q // G0)           # pre-shuffle source channel
        g3 = sq // MpG
        A[g3 * CpG:(g3 + 1) * CpG, q] = W3[sq]
    A2 = s2[:, None] * A * s3[None, :]            # scales folded in
    bias_out = s3 * (b2f @ A) + b3f               # (MID,) constant part

    # per-W-tap channel mixing: y1 channel (m1, c) -> output channel q (sum m2)
    blk = np.zeros((K, R1, C, MID))
    for m1 in range(R1):
        for c in range(C):
            p1 = c * R1 + m1                      # conv2 input channel
            for m2 in range(R2):
                o2 = p1 * R2 + m2                 # conv2 output channel
                blk[:, m1, c, :] += W2w[o2][:, None] * A2[o2][None, :]

    # fused matrix: y1 lane (w*C + c) of copy m1 -> out lane (w2*MID + q),
    # W-stride and zero padding of conv2 are encoded in the band structure.
    bigM = np.zeros((R1, W * C, W2 * MID))
    for kw in range(K):
        for w2 in range(W2):
            w = w2 * S + kw - P
            if 0 <= w < W:
                bigM[:, w * C:(w + 1) * C, w2 * MID:(w2 + 1) * MID] += blk[kw]

    biasvec = np.tile(bias_out, W2).reshape(1, W2 * MID)

    f32 = lambda a: jnp.asarray(a, jnp.float32)
    return {'w1': f32(w1lane), 'b1': f32(b1lane),
            'M': f32(bigM), 'bo': f32(biasvec)}


# ----------------------------------------------------------------------------
# Wrapper around pallas_call.
# ----------------------------------------------------------------------------
def microblock_forward(x_nchw, kp, cfg):
    K, S = cfg['K'], cfg['stride']
    C, R1, MID = cfg['C'], cfg['r1'], cfg['mid']
    N, _, H, W = x_nchw.shape
    P = (K - 1) // 2
    H1 = (H + 2 * P - K) // S + 1
    W2 = (W + 2 * P - K) // S + 1
    WC, L2 = W * C, W2 * MID
    H_pad = H + 2 * P

    # NCHW -> lane layout (N, H, W*C) (w-major, c-minor), zero-pad H only.
    x_lane = jnp.transpose(x_nchw, (0, 2, 3, 1)).reshape(N, H, WC)
    x_lane = x_lane.astype(jnp.float32)
    x_pad = jnp.pad(x_lane, ((0, 0), (P, P), (0, 0)))

    # Batch tiling: several images per grid step to amortize pipeline overhead.
    B_TILE = min(N, 8)
    NG = pl.cdiv(N, B_TILE)
    N_pad = NG * B_TILE
    if N_pad != N:
        x_pad = jnp.pad(x_pad, ((0, N_pad - N), (0, 0), (0, 0)))

    kernel = functools.partial(_microblock_kernel, K=K, SH=S, H1=H1,
                               R1=R1, WC=WC)

    weights = [kp['w1'], kp['b1'], kp['M'], kp['bo']]
    weight_specs = [pl.BlockSpec(w.shape, lambda b, _z=(0,) * w.ndim: _z)
                    for w in weights]

    out = pl.pallas_call(
        kernel,
        out_shape=jax.ShapeDtypeStruct((N_pad, H1, L2), jnp.float32),
        grid_spec=pltpu.PrefetchScalarGridSpec(
            num_scalar_prefetch=0,
            grid=(NG,),
            in_specs=[pl.BlockSpec((B_TILE, H_pad, WC), lambda b: (b, 0, 0))]
                     + weight_specs,
            out_specs=pl.BlockSpec((B_TILE, H1, L2), lambda b: (b, 0, 0)),
        ),
        compiler_params=pltpu.CompilerParams(
            dimension_semantics=("parallel",)),   # lets v7x split batch on 2 TCs
    )(x_pad, *weights)

    out = out[:N].reshape(N, H1, W2, MID)          # cheap wrapper-side reshape
    return jnp.transpose(out, (0, 3, 1, 2))        # back to NCHW


# ----------------------------------------------------------------------------
# Pure-JAX reference (mirrors the PyTorch module, eval mode, DyShiftMax=identity)
# ----------------------------------------------------------------------------
def reference_forward(x, params, cfg):
    K, S, G0 = cfg['K'], cfg['stride'], cfg['G0']
    P = (K - 1) // 2
    dn = ('NCHW', 'OIHW', 'NCHW')

    def bn(y, bnp):
        g, b, m, v = bnp
        sh = (1, -1, 1, 1)
        return (y - m.reshape(sh)) / jnp.sqrt(v.reshape(sh) + BN_EPS) \
               * g.reshape(sh) + b.reshape(sh)

    y = jax.lax.conv_general_dilated(x, params['W1'], (S, 1), ((P, P), (0, 0)),
                                     dimension_numbers=dn,
                                     feature_group_count=cfg['C'])
    y = jax.nn.relu(bn(y, params['bn1']))
    y = jax.lax.conv_general_dilated(y, params['W2'], (1, S), ((0, 0), (P, P)),
                                     dimension_numbers=dn,
                                     feature_group_count=cfg['C'] * cfg['r1'])
    y = bn(y, params['bn2'])
    # dysmax1: identity (definition not provided)
    y = jax.lax.conv_general_dilated(y, params['W3'], (1, 1), ((0, 0), (0, 0)),
                                     dimension_numbers=dn,
                                     feature_group_count=G0)
    B, Cm, Hh, Ww = y.shape
    y = y.reshape(B, G0, Cm // G0, Hh, Ww).transpose(0, 2, 1, 3, 4).reshape(B, Cm, Hh, Ww)
    y = bn(y, params['bn3'])
    # dysmax2: identity
    return y


if __name__ == "__main__":
    # Module configuration (small, consistent with MicroBlockA's constraints).
    kernelSize, inchannel, outchannel, midchannel = 3, 4, 16, 8
    G = (2, 2)
    stride = 1
    droprate = 0.0   # dropout is a no-op

    r1, r2 = crack(outchannel / inchannel)
    C1, C2 = inchannel * r1, inchannel * r1 * r2
    assert C2 == outchannel

    key = jax.random.PRNGKey(0)
    ks = jax.random.split(key, 16)

    def nrm(k, shape, scale=0.2):
        return scale * jax.random.normal(k, shape, jnp.float32)

    def bn_params(k0, k1, k2, k3, n):
        return (1.0 + 0.1 * jax.random.normal(k0, (n,), jnp.float32),
                0.1 * jax.random.normal(k1, (n,), jnp.float32),
                0.1 * jax.random.normal(k2, (n,), jnp.float32),
                0.5 + jax.random.uniform(k3, (n,), jnp.float32))

    params = {
        'W1': nrm(ks[0], (C1, 1, kernelSize, 1)),
        'W2': nrm(ks[1], (C2, 1, 1, kernelSize)),
        'W3': nrm(ks[2], (midchannel, C2 // G[0], 1, 1)),
        'bn1': bn_params(ks[3], ks[4], ks[5], ks[6], C1),
        'bn2': bn_params(ks[7], ks[8], ks[9], ks[10], C2),
        'bn3': bn_params(ks[11], ks[12], ks[13], ks[14], midchannel),
    }

    cfg = {'K': kernelSize, 'stride': stride, 'C': inchannel,
           'r1': r1, 'r2': r2, 'mid': midchannel, 'G0': G[0]}

    x = jax.random.normal(ks[15], (2, inchannel, 16, 16), jnp.float32)

    kp = prepare_kernel_params(params, cfg, W=x.shape[3])
    out = microblock_forward(x, kp, cfg)
    out = jax.block_until_ready(out)

    ref = reference_forward(x, params, cfg)
    err = float(jnp.max(jnp.abs(out - ref)))
    if not np.isfinite(err) or err > 1e-2:
        raise SystemExit(f"mismatch vs reference: max abs err = {err}")
    print("KERNEL_OK")
</pallas_src>

<mosaic_0001>
module attributes {stable_mosaic.version = 11 : i64} {
  func.func @_microblock_kernel(%arg0: i32, %arg1: memref<2x18x64xf32, #tpu.memory_space<vmem>>, %arg2: memref<2x3x64xf32, #tpu.memory_space<vmem>>, %arg3: memref<2x1x64xf32, #tpu.memory_space<vmem>>, %arg4: memref<2x64x128xf32, #tpu.memory_space<vmem>>, %arg5: memref<1x128xf32, #tpu.memory_space<vmem>>, %arg6: memref<2x16x128xf32, #tpu.memory_space<vmem>>) attributes {dimension_semantics = [#tpu.dimension_semantics<parallel>], iteration_bounds = array<i64: 1>, scalar_prefetch = 0 : i64, scratch_operands = 0 : i64, tpu.core_type = #tpu.core_type<tc>, window_params = [{transform_indices = @transform_0, window_bounds = array<i64: 2, 18, 64>}, {pipeline_mode = #tpu.pipeline_mode<synchronous>, transform_indices = @transform_1, window_bounds = array<i64: 2, 3, 64>}, {pipeline_mode = #tpu.pipeline_mode<synchronous>, transform_indices = @transform_2, window_bounds = array<i64: 2, 1, 64>}, {pipeline_mode = #tpu.pipeline_mode<synchronous>, transform_indices = @transform_3, window_bounds = array<i64: 2, 64, 128>}, {pipeline_mode = #tpu.pipeline_mode<synchronous>, transform_indices = @transform_4, window_bounds = array<i64: 1, 128>}, {transform_indices = @transform_5, window_bounds = array<i64: 2, 16, 128>}]} {
    %c0 = arith.constant 0 : index
    %c0_0 = arith.constant 0 : index
    %c0_1 = arith.constant 0 : index
    %0 = vector.load %arg1[%c0, %c0_0, %c0_1] : memref<2x18x64xf32, #tpu.memory_space<vmem>>, vector<2x18x64xf32>
    %c0_2 = arith.constant 0 : index
    %c0_3 = arith.constant 0 : index
    %c0_4 = arith.constant 0 : index
    %1 = vector.load %arg2[%c0_2, %c0_3, %c0_4] : memref<2x3x64xf32, #tpu.memory_space<vmem>>, vector<2x3x64xf32>
    %c0_5 = arith.constant 0 : index
    %c0_6 = arith.constant 0 : index
    %c0_7 = arith.constant 0 : index
    %2 = vector.load %arg3[%c0_5, %c0_6, %c0_7] : memref<2x1x64xf32, #tpu.memory_space<vmem>>, vector<2x1x64xf32>
    %c0_8 = arith.constant 0 : index
    %c0_9 = arith.constant 0 : index
    %c0_10 = arith.constant 0 : index
    %3 = vector.load %arg4[%c0_8, %c0_9, %c0_10] : memref<2x64x128xf32, #tpu.memory_space<vmem>>, vector<2x64x128xf32>
    %4 = vector.extract_strided_slice %0 {offsets = [0, 0, 0], sizes = [2, 16, 64], strides = [1, 1, 1]} : vector<2x18x64xf32> to vector<2x16x64xf32>
    %5 = vector.extract_strided_slice %0 {offsets = [0, 1, 0], sizes = [2, 16, 64], strides = [1, 1, 1]} : vector<2x18x64xf32> to vector<2x16x64xf32>
    %6 = vector.extract_strided_slice %0 {offsets = [0, 2, 0], sizes = [2, 16, 64], strides = [1, 1, 1]} : vector<2x18x64xf32> to vector<2x16x64xf32>
    %7 = vector.extract_strided_slice %1 {offsets = [0, 0, 0], sizes = [1, 1, 64], strides = [1, 1, 1]} : vector<2x3x64xf32> to vector<1x1x64xf32>
    %8 = vector.shape_cast %7 : vector<1x1x64xf32> to vector<64xf32>
    %9 = vector.shape_cast %8 : vector<64xf32> to vector<1x1x64xf32>
    %10 = vector.broadcast %9 : vector<1x1x64xf32> to vector<2x16x64xf32>
    %11 = arith.mulf %4, %10 : vector<2x16x64xf32>
    %12 = vector.extract_strided_slice %1 {offsets = [0, 1, 0], sizes = [1, 1, 64], strides = [1, 1, 1]} : vector<2x3x64xf32> to vector<1x1x64xf32>
    %13 = vector.shape_cast %12 : vector<1x1x64xf32> to vector<64xf32>
    %14 = vector.shape_cast %13 : vector<64xf32> to vector<1x1x64xf32>
    %15 = vector.broadcast %14 : vector<1x1x64xf32> to vector<2x16x64xf32>
    %16 = arith.mulf %5, %15 : vector<2x16x64xf32>
    %17 = arith.addf %11, %16 : vector<2x16x64xf32>
    %18 = vector.extract_strided_slice %1 {offsets = [0, 2, 0], sizes = [1, 1, 64], strides = [1, 1, 1]} : vector<2x3x64xf32> to vector<1x1x64xf32>
    %19 = vector.shape_cast %18 : vector<1x1x64xf32> to vector<64xf32>
    %20 = vector.shape_cast %19 : vector<64xf32> to vector<1x1x64xf32>
    %21 = vector.broadcast %20 : vector<1x1x64xf32> to vector<2x16x64xf32>
    %22 = arith.mulf %6, %21 : vector<2x16x64xf32>
    %23 = arith.addf %17, %22 : vector<2x16x64xf32>
    %24 = vector.extract_strided_slice %2 {offsets = [0, 0, 0], sizes = [1, 1, 64], strides = [1, 1, 1]} : vector<2x1x64xf32> to vector<1x1x64xf32>
    %25 = vector.shape_cast %24 : vector<1x1x64xf32> to vector<1x64xf32>
    %26 = vector.shape_cast %25 : vector<1x64xf32> to vector<1x1x64xf32>
    %27 = vector.broadcast %26 : vector<1x1x64xf32> to vector<2x16x64xf32>
    %28 = arith.addf %23, %27 : vector<2x16x64xf32>
    %cst = arith.constant 0.000000e+00 : f32
    %29 = vector.broadcast %cst : f32 to vector<2x16x64xf32>
    %30 = arith.maximumf %28, %29 : vector<2x16x64xf32>
    %31 = vector.shape_cast %30 : vector<2x16x64xf32> to vector<32x64xf32>
    %32 = vector.extract_strided_slice %3 {offsets = [0, 0, 0], sizes = [1, 64, 128], strides = [1, 1, 1]} : vector<2x64x128xf32> to vector<1x64x128xf32>
    %33 = vector.shape_cast %32 : vector<1x64x128xf32> to vector<64x128xf32>
    %cst_11 = arith.constant dense<0.000000e+00> : vector<32x128xf32>
    %34 = tpu.matmul %31, %33, %cst_11 {dimension_numbers = #tpu.dot_dimension_numbers<[1], [0], [0], [1], [0, 0, 1, 1], [], []>} : vector<32x64xf32>, vector<64x128xf32>, vector<32x128xf32> -> vector<32x128xf32>
    %35 = vector.extract_strided_slice %1 {offsets = [1, 0, 0], sizes = [1, 1, 64], strides = [1, 1, 1]} : vector<2x3x64xf32> to vector<1x1x64xf32>
    %36 = vector.shape_cast %35 : vector<1x1x64xf32> to vector<64xf32>
    %37 = vector.shape_cast %36 : vector<64xf32> to vector<1x1x64xf32>
    %38 = vector.broadcast %37 : vector<1x1x64xf32> to vector<2x16x64xf32>
    %39 = arith.mulf %4, %38 : vector<2x16x64xf32>
    %40 = vector.extract_strided_slice %1 {offsets = [1, 1, 0], sizes = [1, 1, 64], strides = [1, 1, 1]} : vector<2x3x64xf32> to vector<1x1x64xf32>
    %41 = vector.shape_cast %40 : vector<1x1x64xf32> to vector<64xf32>
    %42 = vector.shape_cast %41 : vector<64xf32> to vector<1x1x64xf32>
    %43 = vector.broadcast %42 : vector<1x1x64xf32> to vector<2x16x64xf32>
    %44 = arith.mulf %5, %43 : vector<2x16x64xf32>
    %45 = arith.addf %39, %44 : vector<2x16x64xf32>
    %46 = vector.extract_strided_slice %1 {offsets = [1, 2, 0], sizes = [1, 1, 64], strides = [1, 1, 1]} : vector<2x3x64xf32> to vector<1x1x64xf32>
    %47 = vector.shape_cast %46 : vector<1x1x64xf32> to vector<64xf32>
    %48 = vector.shape_cast %47 : vector<64xf32> to vector<1x1x64xf32>
    %49 = vector.broadcast %48 : vector<1x1x64xf32> to vector<2x16x64xf32>
    %50 = arith.mulf %6, %49 : vector<2x16x64xf32>
    %51 = arith.addf %45, %50 : vector<2x16x64xf32>
    %52 = vector.extract_strided_slice %2 {offsets = [1, 0, 0], sizes = [1, 1, 64], strides = [1, 1, 1]} : vector<2x1x64xf32> to vector<1x1x64xf32>
    %53 = vector.shape_cast %52 : vector<1x1x64xf32> to vector<1x64xf32>
    %54 = vector.shape_cast %53 : vector<1x64xf32> to vector<1x1x64xf32>
    %55 = vector.broadcast %54 : vector<1x1x64xf32> to vector<2x16x64xf32>
    %56 = arith.addf %51, %55 : vector<2x16x64xf32>
    %cst_12 = arith.constant 0.000000e+00 : f32
    %57 = vector.broadcast %cst_12 : f32 to vector<2x16x64xf32>
    %58 = arith.maximumf %56, %57 : vector<2x16x64xf32>
    %59 = vector.shape_cast %58 : vector<2x16x64xf32> to vector<32x64xf32>
    %60 = vector.extract_strided_slice %3 {offsets = [1, 0, 0], sizes = [1, 64, 128], strides = [1, 1, 1]} : vector<2x64x128xf32> to vector<1x64x128xf32>
    %61 = vector.shape_cast %60 : vector<1x64x128xf32> to vector<64x128xf32>
    %cst_13 = arith.constant dense<0.000000e+00> : vector<32x128xf32>
    %62 = tpu.matmul %59, %61, %cst_13 {dimension_numbers = #tpu.dot_dimension_numbers<[1], [0], [0], [1], [0, 0, 1, 1], [], []>} : vector<32x64xf32>, vector<64x128xf32>, vector<32x128xf32> -> vector<32x128xf32>
    %63 = arith.addf %34, %62 : vector<32x128xf32>
    %c0_14 = arith.constant 0 : index
    %c0_15 = arith.constant 0 : index
    %64 = vector.load %arg5[%c0_14, %c0_15] : memref<1x128xf32, #tpu.memory_space<vmem>>, vector<1x128xf32>
    %65 = vector.broadcast %64 : vector<1x128xf32> to vector<32x128xf32>
    %66 = arith.addf %63, %65 : vector<32x128xf32>
    %67 = vector.shape_cast %66 : vector<32x128xf32> to vector<2x16x128xf32>
    %c0_16 = arith.constant 0 : index
    %c0_17 = arith.constant 0 : index
    %c0_18 = arith.constant 0 : index
    %68 = vector.load %arg6[%c0_16, %c0_17, %c0_18] : memref<2x16x128xf32, #tpu.memory_space<vmem>>, vector<2x16x128xf32>
    tpu.vector_store %arg6[%c0_16, %c0_17, %c0_18], %67 {strides = array<i32>} : memref<2x16x128xf32, #tpu.memory_space<vmem>>, vector<2x16x128xf32>,
    return
  }
  func.func @transform_0(%arg0: i32) -> (i32, i32, i32) {
    %c0_i32 = arith.constant 0 : i32
    %c0_i32_0 = arith.constant 0 : i32
    %c0_i32_1 = arith.constant 0 : i32
    return %arg0, %c0_i32, %c0_i32_0 : i32, i32, i32
  }
  func.func @transform_1(%arg0: i32) -> (i32, i32, i32) {
    %c0_i32 = arith.constant 0 : i32
    %c0_i32_0 = arith.constant 0 : i32
    %c0_i32_1 = arith.constant 0 : i32
    %c0_i32_2 = arith.constant 0 : i32
    return %c0_i32, %c0_i32_0, %c0_i32_1 : i32, i32, i32
  }
  func.func @transform_2(%arg0: i32) -> (i32, i32, i32) {
    %c0_i32 = arith.constant 0 : i32
    %c0_i32_0 = arith.constant 0 : i32
    %c0_i32_1 = arith.constant 0 : i32
    %c0_i32_2 = arith.constant 0 : i32
    return %c0_i32, %c0_i32_0, %c0_i32_1 : i32, i32, i32
  }
  func.func @transform_3(%arg0: i32) -> (i32, i32, i32) {
    %c0_i32 = arith.constant 0 : i32
    %c0_i32_0 = arith.constant 0 : i32
    %c0_i32_1 = arith.constant 0 : i32
    %c0_i32_2 = arith.constant 0 : i32
    return %c0_i32, %c0_i32_0, %c0_i32_1 : i32, i32, i32
  }
  func.func @transform_4(%arg0: i32) -> (i32, i32) {
    %c0_i32 = arith.constant 0 : i32
    %c0_i32_0 = arith.constant 0 : i32
    %c0_i32_1 = arith.constant 0 : i32
    return %c0_i32, %c0_i32_0 : i32, i32
  }
  func.func @transform_5(%arg0: i32) -> (i32, i32, i32) {
    %c0_i32 = arith.constant 0 : i32
    %c0_i32_0 = arith.constant 0 : i32
    %c0_i32_1 = arith.constant 0 : i32
    return %arg0, %c0_i32, %c0_i32_0 : i32, i32, i32
  }
}

</mosaic_0001>

<bundles_post_ra>
// kernel: tpu_custom_call.1
= control target key start
LH: loop header
LB: loop body
LE: loop exit
PB: predicated region body
PF: predicated region fallthrough
CT: control target
= control target key end

     0   :  { %10 = vsyncpa [#allocation3], 0  ;;  %s814_s0 = inlined_call_operand.vmem [shape: f32[2,18,64], index: 0, kind: input, shape index: {}]   ;;  %s815_s1 = inlined_call_operand.vmem [shape: f32[2,3,64], index: 1, kind: input, shape index: {}]   ;;  %s816_s2 = inlined_call_operand.vmem [shape: f32[2,1,64], index: 2, kind: input, shape index: {}]   ;;  %s817_s3 = inlined_call_operand.hbm [shape: f32[2,64,128], index: 3, kind: input, shape index: {}]   ;;  %s818_s4 = inlined_call_operand.vmem [shape: f32[1,128], index: 4, kind: input, shape index: {}]   ;;  %s819_s5 = inlined_call_operand.hbm [shape: f32[2,16,128], index: 5, kind: output, shape index: {}]  }
   0x1   :  { %11 = vsyncpa [#allocation4], 0  ;;  %s637_s18 = smov [#allocation2]   ;;  %s589_s22 = scalar_lea.hbm %s817_s3, 2048 }
   0x2   :  { %s23_s19 = sshll.u32 %s637_s18, 4  ;;  %p590_p0 = scmp.ne.s32.totalorder %s817_s3, %s589_s22  ;;  %s24_s19 = int_to_ptr.vmem [resolvable:$true] %s23_s19 }
   0x3   :  { %p593_p1 = scmp.lt.u32.totalorder %s589_s22, %s817_s3 }
   0x5   :  { %p595_p2 = pnand %p593_p1, %p590_p0 }
   0x7   :  { %598 = shalt.err (!%p595_p2)
}
   0x8   :  { %s599_s27 = scalar_lea.vmem %s24_s19, 2048  ;;  %p604_p4 = scmp.lt.s32.totalorder %s24_s19, %s24_s19 }
   0x9   :  { %p600_p3 = scmp.ne.s32.totalorder %s24_s19, %s599_s27  ;;  %p605_p5 = scmp.lt.s32.totalorder %s599_s27, %s599_s27 }
   0xb   :  { %p606_p6 = por %p605_p5, %p604_p4 }
   0xd   :  { %p607_p7 = pnand %p606_p6, %p600_p3 }
   0xf   :  { %610 = shalt.err (!%p607_p7)
}
  0x10   :  { %s638_s28 = smov 128   ;;  %s639_s29 = smov 8  }
  0x11   :  { %29 = dma.hbm_to_vmem [thread:$0]  %s817_s3, 2048, %s24_s19, [#allocation3], %s638_s28, %s638_s28, %s639_s29  }
  0x12   :  { %633 = dma.done.wait [#allocation3], 2048  }
  0x13   :  { %634 = vsyncadd [#allocation3], 4294965248  ;;  %v61_v0 = vlaneseq  ;;  %v53_v2 = vld [vmem:[#allocation2 + $0x40] sm:$0xff]  ;;  %v54_v3 = vld [vmem:[#allocation2 + $0x48] sm:$0xff]  ;;  %vm85_vm0 = vcmask 1046528   ;;  %vm120_vm1 = vcmask 1045504  }
  0x14   :  { %v45_v4 = vld [vmem:[#allocation2] sm:$0xff]  ;;  %v549_v5 = vpack.c.bf16 %v54_v3, %v53_v2  ;;  %v46_v6 = vld [vmem:[#allocation2 + $0x8] sm:$0xff]  ;;  %v55_v7 = vld [vmem:[#allocation2 + $0x50] sm:$0xff]  ;;  %vm243_vm2 = vcmask 523264   ;;  %s640_s25 = smov [#allocation5]  }
  0x15   :  { %v62_v1 = vshrl.u32 %v61_v0, 7  ;;  %v56_v8 = vld [vmem:[#allocation2 + $0x58] sm:$0xff]  ;;  %v565_v9 = vpack.c.bf16 %v46_v6, %v45_v4  ;;  %v47_v11 = vld [vmem:[#allocation2 + $0x10] sm:$0xff]  ;;  %v57_v13 = vld [vmem:[#allocation2 + $0x60] sm:$0xff]  ;;  %s458_s26 = sshll.u32 %s640_s25, 4  ;;  %s459_s26 = int_to_ptr.vmem [resolvable:$true] %s458_s26 }
  0x16   :  { %v553_v10 = vpack.c.bf16 %v56_v8, %v55_v7  ;;  %v48_v12 = vld [vmem:[#allocation2 + $0x18] sm:$0xff]  ;;  %550 = vmatprep.subr.bf16.mxu1 %v549_v5  ;;  %v58_v15 = vld [vmem:[#allocation2 + $0x68] sm:$0xff]  ;;  %v49_v16 = vld [vmem:[#allocation2 + $0x20] sm:$0xff]  ;;  %p616_p9 = scmp.lt.s32.totalorder %s459_s26, %s459_s26 }
  0x17   :  { %v569_v14 = vpack.c.bf16 %v48_v12, %v47_v11  ;;  %v50_v17 = vld [vmem:[#allocation2 + $0x28] sm:$0xff]  ;;  %v63_v18 = vsub.s32 0, %v62_v1  ;;  %v71_v19 = vsub.s32 1, %v62_v1  ;;  %v106_v20 = vsub.s32 2, %v62_v1  ;;  %566 = vmatprep.subr.bf16.mxu0 %v565_v9  ;;  %552 = vmatpush3.bf16.msra.mxu1 %v549_v5  ;;  %v59_v21 = vld [vmem:[#allocation2 + $0x70] sm:$0xff]  ;;  %v60_v22 = vld [vmem:[#allocation2 + $0x78] sm:$0xff] }
  0x18   :  { %568 = vmatpush3.bf16.msra.mxu0 %v565_v9  ;;  %554 = vmatprep.subr.bf16.mxu1 %v553_v10  ;;  %v557_v23 = vpack.c.bf16 %v58_v15, %v57_v13  ;;  %v51_v24 = vld [vmem:[#allocation2 + $0x30] sm:$0xff]  ;;  %v52_v25 = vld [vmem:[#allocation2 + $0x38] sm:$0xff]  ;;  %v35_v26 = vld [vmem:[%s814_s0] sm:$0xff]  ;;  %v573_v27 = vpack.c.bf16 %v50_v17, %v49_v16  ;;  %v561_v35 = vpack.c.bf16 %v60_v22, %v59_v21 }
  0x19   :  { %570 = vmatprep.subr.bf16.mxu0 %v569_v14  ;;  %v36_v28 = vld [vmem:[%s814_s0 + $0x8] sm:$0xff]  ;;  %v42_v29 = vld [vmem:[%s815_s1 + $0x4] sm:$0x7]  ;;  %v41_v30 = vld [vmem:[%s815_s1] sm:$0x7]  ;;  %v577_v36 = vpack.c.bf16 %v52_v25, %v51_v24 }
  0x1a   :  { %v698_v31 = vrot.slane %v42_v29, %v63_v18  ;;  %v700_v32 = vrot.slane %v42_v29, %v71_v19  ;;  %v702_v33 = vrot.slane %v42_v29, %v106_v20  ;;  %v704_v34 = vrot.slane %v41_v30, %v63_v18  ;;  %v37_v50 = vld [vmem:[%s814_s0 + $0x10] sm:$0x3]  ;;  %v730_v63 = vld [vmem:[%s816_s2 + $0x1] ss:$0 sm:$0xff]  ;;  %v38_v4 = vld [vmem:[%s814_s0 + $0x18] sm:$0xff] }
  0x1b   :  { %556 = vmatpush3.bf16.msra.mxu1 %v553_v10  ;;  %v706_v37 = vrot.slane %v41_v30, %v71_v19  ;;  %v708_v38 = vrot.slane %v41_v30, %v106_v20  ;;  %v743_v9 = vld [vmem:[%s816_s2] ss:$0 sm:$0xff] }
  0x1c   :  { %572 = vmatpush3.bf16.msra.mxu0 %v569_v14  ;;  %558 = vmatprep.subr.bf16.mxu1 %v557_v23  ;;  %v157_v39 = vmul.f32 %v698_v31, %v35_v26  ;;  %v165_v40 = vmul.f32 %v700_v32, %v35_v26  ;;  %v166_v41 = vmul.f32 %v700_v32, %v36_v28  ;;  %v39_v13 = vld [vmem:[%s814_s0 + $0x20] sm:$0xff] }
  0x1d   :  { %574 = vmatprep.subr.bf16.mxu0 %v573_v27  ;;  %v199_v42 = vmul.f32 %v702_v33, %v35_v26  ;;  %v200_v43 = vmul.f32 %v702_v33, %v36_v28  ;;  %v65_v44 = vmul.f32 %v704_v34, %v35_v26  ;;  %v73_v45 = vmul.f32 %v706_v37, %v35_v26 }
  0x1e   :  { %v177_v46 = vrot.slane %v165_v40, 1  ;;  %v178_v47 = vrot.slane %v166_v41, 1  ;;  %v74_v48 = vmul.f32 %v706_v37, %v36_v28  ;;  %v108_v49 = vmul.f32 %v708_v38, %v35_v26 }
  0x1f   :  { %560 = vmatpush3.bf16.msra.mxu1 %v557_v23  ;;  %v211_v51 = vrot.slane %v199_v42, 2  ;;  %v212_v52 = vrot.slane %v200_v43, 2  ;;  %v86_v53 = vrot.slane %v73_v45, 1  ;;  %v109_v54 = vmul.f32 %v708_v38, %v36_v28 }
  0x20   :  { %576 = vmatpush3.bf16.msra.mxu0 %v573_v27  ;;  %562 = vmatprep.subr.bf16.mxu1 %v561_v35  ;;  %v179_v55 = vsel %vm85_vm0, %v177_v46, %v178_v47  ;;  %v87_v56 = vrot.slane %v74_v48, 1  ;;  %v121_v57 = vrot.slane %v108_v49, 2  ;;  %v158_v58 = vmul.f32 %v698_v31, %v36_v28  ;;  %v40_v49 = vld [vmem:[%s814_s0 + $0x28] sm:$0x3] }
  0x21   :  { %578 = vmatprep.subr.bf16.mxu0 %v577_v36  ;;  %v191_v59 = vadd.f32 %v179_v55, %v157_v39  ;;  %v213_v60 = vsel %vm120_vm1, %v211_v51, %v212_v52  ;;  %v122_v61 = vrot.slane %v109_v54, 2  ;;  %v167_v62 = vmul.f32 %v700_v32, %v37_v50 }
  0x22   :  { %v88_v0 = vsel %vm85_vm0, %v86_v53, %v87_v56  ;;  %v201_v1 = vmul.f32 %v702_v33, %v37_v50  ;;  %v66_v2 = vmul.f32 %v704_v34, %v36_v28  ;;  %v75_v3 = vmul.f32 %v706_v37, %v37_v50 }
  0x23   :  { %564 = vmatpush3.bf16.msra.mxu1 %v561_v35  ;;  %v225_v5 = vadd.f32 %v213_v60, %v191_v59  ;;  %v100_v6 = vadd.f32 %v88_v0, %v65_v44  ;;  %v123_v7 = vsel %vm120_vm1, %v121_v57, %v122_v61  ;;  %v180_v8 = vrot.slane %v167_v62, 1 }
  0x24   :  { %580 = vmatpush3.bf16.msra.mxu0 %v577_v36  ;;  %v214_v10 = vrot.slane %v201_v1, 2  ;;  %v89_v11 = vrot.slane %v75_v3, 1  ;;  %v110_v12 = vmul.f32 %v708_v38, %v37_v50  ;;  %v159_v14 = vmul.f32 %v698_v31, %v38_v4 }
  0x25   :  { %v235_v15 = vadd.f32 %v730_v63, %v225_v5  ;;  %v135_v16 = vadd.f32 %v123_v7, %v100_v6  ;;  %v181_v17 = vsel %vm85_vm0, %v178_v47, %v180_v8  ;;  %v168_v18 = vmul.f32 %v700_v32, %v38_v4 }
  0x26   :  { %v192_v19 = vadd.f32 %v181_v17, %v158_v58  ;;  %v215_v20 = vsel %vm120_vm1, %v212_v52, %v214_v10  ;;  %v90_v21 = vsel %vm85_vm0, %v87_v56, %v89_v11  ;;  %v124_v22 = vrot.slane %v110_v12, 2 }
  0x27   :  { %v239_v23 = vmax.f32 %v235_v15, 0.0  ;;  %v145_v24 = vadd.f32 %v743_v9, %v135_v16  ;;  %v101_v25 = vadd.f32 %v90_v21, %v66_v2  ;;  %v169_v26 = vmul.f32 %v700_v32, %v39_v13 }
  0x28   :  { %v226_v27 = vadd.f32 %v215_v20, %v192_v19  ;;  %v125_v28 = vsel %vm120_vm1, %v122_v61, %v124_v22  ;;  %v182_v29 = vrot.slane %v168_v18, 1  ;;  %v202_v30 = vmul.f32 %v702_v33, %v38_v4 }
  0x29   :  { %521 = vmatprep.mubr.msk.f32.mxu1 %vm243_vm2, %v239_v23  ;;  %v149_v35 = vmax.f32 %v145_v24, 0.0  ;;  %v136_v36 = vadd.f32 %v125_v28, %v101_v25  ;;  %v183_v39 = vrot.slane %v169_v26, 1  ;;  %v203_v40 = vmul.f32 %v702_v33, %v39_v13  ;;  %v480_v25 = vld [vmem:[%s818_s4] ss:$0 sm:$0xff]  ;;  %s611_s4 = scalar_lea.vmem %s459_s26, 512 }
  0x2a   :  { %v236_v41 = vadd.f32 %v730_v63, %v226_v27  ;;  %v216_v42 = vrot.slane %v202_v30, 2  ;;  %v67_v43 = vmul.f32 %v704_v34, %v38_v4  ;;  %v76_v44 = vmul.f32 %v706_v37, %v38_v4  ;;  %p612_p8 = scmp.ne.s32.totalorder %s459_s26, %s611_s4  ;;  %p617_p10 = scmp.lt.s32.totalorder %s611_s4, %s611_s4 }
  0x2b   :  { %543 = vmatprep.mubr.msk.f32.mxu0 %vm243_vm2, %v149_v35  ;;  %v146_v45 = vadd.f32 %v743_v9, %v136_v36  ;;  %v184_v46 = vsel %vm85_vm0, %v182_v29, %v183_v39  ;;  %v217_v47 = vrot.slane %v203_v40, 2  ;;  %v77_v48 = vmul.f32 %v706_v37, %v39_v13 }
  0x2c   :  { %v240_v50 = vmax.f32 %v236_v41, 0.0  ;;  %v193_v51 = vadd.f32 %v184_v46, %v159_v14  ;;  %v91_v52 = vrot.slane %v76_v44, 1  ;;  %v111_v53 = vmul.f32 %v708_v38, %v38_v4  ;;  %p618_p11 = por %p617_p10, %p616_p9 }
  0x2d   :  { %v150_v54 = vmax.f32 %v146_v45, 0.0  ;;  %v218_v55 = vsel %vm120_vm1, %v216_v42, %v217_v47  ;;  %v92_v56 = vrot.slane %v77_v48, 1  ;;  %v112_v57 = vmul.f32 %v708_v38, %v39_v13 }
  0x2e   :  { %522 = vmatmul.mubr.msk.f32.vlgmr.msra.gmra.mrb[0].mxu1 %vm243_vm2, %v240_v50  ;;  %v227_v58 = vadd.f32 %v218_v55, %v193_v51  ;;  %v126_v59 = vrot.slane %v111_v53, 2  ;;  %v170_v60 = vmul.f32 %v700_v32, %v40_v49  ;;  %v160_v0 = vmul.f32 %v698_v31, %v39_v13  ;;  %p619_p12 = pnand %p618_p11, %p612_p8 }
  0x2f   :  { %544 = vmatmul.mubr.msk.f32.vlgmr.msra.gmra.mrb[0].mxu0 %vm243_vm2, %v150_v54  ;;  %v93_v61 = vsel %vm85_vm0, %v91_v52, %v92_v56  ;;  %v127_v62 = vrot.slane %v112_v57, 2  ;;  %v204_v1 = vmul.f32 %v702_v33, %v40_v49  ;;  %v78_v5 = vmul.f32 %v706_v37, %v40_v49 }
  0x30   :  { %v237_v2 = vadd.f32 %v730_v63, %v227_v58  ;;  %v102_v3 = vadd.f32 %v93_v61, %v67_v43  ;;  %v185_v4 = vrot.slane %v170_v60, 1  ;;  %v68_v32 = vmul.f32 %v704_v34, %v39_v13 }
  0x31   :  { %v128_v6 = vsel %vm120_vm1, %v126_v59, %v127_v62  ;;  %v219_v7 = vrot.slane %v204_v1, 2  ;;  %v113_v8 = vmul.f32 %v708_v38, %v40_v49  ;;  %v94_v31 = vrot.slane %v78_v5, 1 }
  0x32   :  { %v241_v10 = vmax.f32 %v237_v2, 0.0  ;;  %v137_v11 = vadd.f32 %v128_v6, %v102_v3  ;;  %v186_v12 = vsel %vm85_vm0, %v183_v39, %v185_v4 }
  0x33   :  { %v194_v14 = vadd.f32 %v186_v12, %v160_v0  ;;  %v220_v33 = vsel %vm120_vm1, %v217_v47, %v219_v7  ;;  %v129_v15 = vrot.slane %v113_v8, 2  ;;  %v95_v16 = vsel %vm85_vm0, %v92_v56, %v94_v31 }
  0x34   :  { %524 = vmatprep.mubr.msk.f32.mxu1 %vm243_vm2, %v241_v10  ;;  %v147_v37 = vadd.f32 %v743_v9, %v137_v11  ;;  %v103_v18 = vadd.f32 %v95_v16, %v68_v32 }
  0x35   :  { %v228_v17 = vadd.f32 %v220_v33, %v194_v14  ;;  %v130_v34 = vsel %vm120_vm1, %v127_v62, %v129_v15 }
  0x36   :  { %v151_v38 = vmax.f32 %v147_v37, 0.0  ;;  %v138_v19 = vadd.f32 %v130_v34, %v103_v18 }
  0x37   :  { %v238_v13 = vadd.f32 %v730_v63, %v228_v17 }
  0x38   :  { %546 = vmatprep.mubr.msk.f32.mxu0 %vm243_vm2, %v151_v38  ;;  %v148_v21 = vadd.f32 %v743_v9, %v138_v19 }
  0x39   :  { %v242_v20 = vmax.f32 %v238_v13, 0.0 }
  0x3a   :  { %v152_v22 = vmax.f32 %v148_v21, 0.0 }
  0x3b   :  { %525 = vmatmul.mubr.msk.f32.gmra.mrb[2].mxu1 %vm243_vm2, %v242_v20 }
  0x3c   :  { %547 = vmatmul.mubr.msk.f32.gmra.mrb[2].mxu0 %vm243_vm2, %v152_v22 }
 0x101   :  { %v523_v23 = vpop.f32.mrb[0].mxu1 }
 0x102   :  { %v545_v24 = vpop.f32.mrb[0].mxu0  ;;  %v322_v26 = vpop.f32.mrb[1].mxu1 }
 0x103   :  { %v425_v27 = vadd.f32 %v545_v24, %v523_v23  ;;  %v419_v63 = vpop.f32.mrb[1].mxu0 }
 0x104   :  { %v420_v28 = vadd.f32 %v419_v63, %v322_v26 }
 0x105   :  { %v446_v29 = vadd.f32 %v480_v25, %v425_v27 }
 0x106   :  { %v445_v30 = vadd.f32 %v480_v25, %v420_v28 }
 0x107   :  { %450 = vst [vmem:[#allocation5 + $0x8] sm:$0xff] %v446_v29 }
 0x108   :  { %449 = vst [vmem:[#allocation5] sm:$0xff] %v445_v30 }
 0x10e   :  { %v526_v9 = vpop.f32.mrb[2].mxu1 }
 0x10f   :  { %v332_v35 = vpop.f32.mrb[3].mxu1  ;;  %v548_v36 = vpop.f32.mrb[2].mxu0 }
 0x110   :  { %v435_v39 = vadd.f32 %v548_v36, %v526_v9  ;;  %v429_v40 = vpop.f32.mrb[3].mxu0 }
 0x111   :  { %v430_v41 = vadd.f32 %v429_v40, %v332_v35 }
 0x112   :  { %v448_v42 = vadd.f32 %v480_v25, %v435_v39 }
 0x113   :  { %v447_v43 = vadd.f32 %v480_v25, %v430_v41 }
 0x114   :  { %452 = vst [vmem:[#allocation5 + $0x18] sm:$0xff] %v448_v42 }
 0x115   :  { %451 = vst [vmem:[#allocation5 + $0x10] sm:$0xff] %v447_v43 }
 0x116   :  { %622 = shalt.err (!%p619_p12)
}
 0x117   :  { %s623_s6 = scalar_lea.hbm %s819_s5, 512 }
 0x118   :  { %p624_p13 = scmp.ne.s32.totalorder %s819_s5, %s623_s6  ;;  %p627_p0 = scmp.lt.u32.totalorder %s623_s6, %s819_s5 }
 0x11a   :  { %p629_p1 = pnand %p627_p0, %p624_p13 }
 0x11c   :  { %632 = shalt.err (!%p629_p1)
}
 0x11d   :  { %464 = dma.vmem_to_hbm [thread:$0]  %s459_s26, 512, %s819_s5, [#allocation4], %s638_s28, %s638_s28, %s639_s29  }
 0x11e   :  { %635 = dma.done.wait [#allocation4], 512  }
 0x11f   :  { %636 = vsyncadd [#allocation4], 4294966784 }
 0x120   :  { %468 = vsyncpa [#allocation3], 1 }
 0x121   :  { %469 = vsyncpa [#allocation4], 1 }

</bundles_post_ra>
